<compile_context>
chip_gen: v5e
topology: v5e:2x2
jax: 0.10.0
libtpu: 0.0.40
codegen_flags: <defaults>
</compile_context>

<pallas_src>
import functools
import math

import jax
import jax.numpy as jnp
from jax import lax
from jax.experimental import pallas as pl
from jax.experimental.pallas import tpu as pltpu

MIN_EXPERT_CAPACITY = 4


# --------------------------------------------------------------------------
# Pallas kernel: fused expert FFN (x @ w1^T -> ReLU -> @ w2), H-tiled
# --------------------------------------------------------------------------
def _expert_ffn_kernel(x_ref, w1t_ref, w2_ref, o_ref, *scratch, h_tiled):
    # x:   (1, tM, D) bf16
    # w1t: (1, tH, D) bf16   (pre-transposed w1 -> contiguous (tH, D) slab)
    # w2:  (1, tH, D) bf16
    # o:   (1, tM, D) bf16
    # First matmul contracts the last (D) dims of x and w1t: (tM, D) . (tH, D)^T.
    h = lax.dot_general(
        x_ref[0], w1t_ref[0],
        dimension_numbers=(((1,), (1,)), ((), ())),
        preferred_element_type=jnp.float32,
    )
    h = jnp.maximum(h, 0.0)                       # nn.ReLU (MoE default activation)
    part = jnp.dot(h.astype(w2_ref.dtype), w2_ref[0],
                   preferred_element_type=jnp.float32)

    if not h_tiled:
        # Single H step: skip the accumulator round-trip entirely.
        o_ref[0] = part.astype(o_ref.dtype)
        return

    acc_ref, = scratch

    @pl.when(pl.program_id(2) == 0)
    def _():
        acc_ref[...] = jnp.zeros_like(acc_ref)

    acc_ref[...] += part

    @pl.when(pl.program_id(2) == pl.num_programs(2) - 1)
    def _():
        o_ref[0] = acc_ref[...].astype(o_ref.dtype)


# --------------------------------------------------------------------------
# Generation-aware VMEM / tile sizing
# --------------------------------------------------------------------------
def _round_up(x, m):
    return ((x + m - 1) // m) * m


def _vmem_config():
    """(budget_bytes, vmem_limit_cap_bytes, physical_capacity_bytes)."""
    cap = 64 * 1024 * 1024
    try:
        info = pltpu.get_tpu_info()
        cap = int(getattr(info, "vmem_capacity_bytes", cap))
    except Exception:
        pass
    if cap <= 64 * 1024 * 1024:            # v7x-class: 64 MiB physical VMEM per TC
        return 36 * 1024 * 1024, 50 * 1024 * 1024, cap
    return 64 * 1024 * 1024, 96 * 1024 * 1024, cap   # v5e / v6e: 128 MiB physical


def _fixed_vmem_bytes(tM, D):
    bf = 2
    # x block + out block (double-buffered) + f32 accumulator (worst case).
    return 2 * tM * D * bf + 2 * tM * D * bf + tM * D * 4


def _ffn_vmem_bytes(tM, tH, D, h_tiled, w_buffers=2):
    bf = 2
    est = 2 * tM * D * bf                       # x block, double-buffered
    est += 2 * tM * D * bf                      # out block, double-buffered
    est += w_buffers * tH * D * bf              # w1t slab
    est += w_buffers * tH * D * bf              # w2 slab
    est += tM * tH * 4 + tM * tH * bf           # hidden intermediate: f32 + bf16 copy
    if h_tiled:
        est += tM * D * 4                       # f32 accumulator scratch
    return est


def _choose_m_tile(M, D, budget):
    """256-aligned M tiles (target 512 rows for the v6e/v7x 256-deep MXU); never
    lets the full-M accumulator/blocks blow past the VMEM budget on odd shapes."""
    M_pad = _round_up(max(M, 1), 8)
    if M_pad <= 512 and _fixed_vmem_bytes(M_pad, D) <= budget // 2:
        return M_pad, M_pad                     # single full-extent tile
    tM = 512
    while tM > 128 and _fixed_vmem_bytes(tM, D) > budget // 2:
        tM //= 2
    return tM, _round_up(M, tM)


def _choose_h_tile(tM, D, H, budget, w_buffers=2):
    """Largest 256-multiple divisor of H (128 fallback) whose total footprint --
    including the (tM, tH) hidden intermediate -- fits the budget."""
    if _ffn_vmem_bytes(tM, H, D, False, w_buffers) <= budget:
        return H                                # no H tiling needed
    if H % 128 != 0:
        return H                                # can't legally tile; best effort
    step = 256 if H % 256 == 0 else 128
    cands = [t for t in range(step, H, step) if H % t == 0]
    for tH in sorted(cands, reverse=True):
        if _ffn_vmem_bytes(tM, tH, D, True, w_buffers) <= budget:
            return tH
    return cands[0] if cands else H             # best effort


def _weight_spec(block_shape, index_map, n_buf):
    if n_buf > 2 and hasattr(pl, "Buffered"):
        try:
            return pl.BlockSpec(block_shape, index_map, pipeline_mode=pl.Buffered(n_buf))
        except TypeError:
            pass
    return pl.BlockSpec(block_shape, index_map)


# --------------------------------------------------------------------------
# Expert FFN wrapper
# --------------------------------------------------------------------------
def expert_ffn(x, w1t, w2):
    """Fused per-expert FFN.

    x:   (E, M, D)  (M = batch * expert_capacity tokens per expert)
    w1t: (E, H, D)  pre-transposed w1 (logical w1 is (E, D, H)), bf16
    w2:  (E, H, D)  bf16
    returns (E, M, D) bf16 (f32-accumulated inside the kernel).
    """
    E, M, D = x.shape
    _, H, _ = w1t.shape
    budget, limit_cap, vmem_cap = _vmem_config()

    # Weights are stored in bf16 by init_params; only cast if the caller didn't.
    if x.dtype != jnp.bfloat16:
        x = x.astype(jnp.bfloat16)
    if w1t.dtype != jnp.bfloat16:
        w1t = w1t.astype(jnp.bfloat16)
    if w2.dtype != jnp.bfloat16:
        w2 = w2.astype(jnp.bfloat16)

    tM, M_pad = _choose_m_tile(M, D, budget)
    if M_pad != M:
        x = jnp.pad(x, ((0, 0), (0, M_pad - M), (0, 0)))

    w_buffers = 2
    tH = _choose_h_tile(tM, D, H, budget, w_buffers)
    n_h = H // tH
    h_tiled = n_h > 1

    # 3-deep weight pipeline on 128-MiB-VMEM chips (v5e/v6e) when H is streamed.
    if vmem_cap > 64 * 1024 * 1024 and n_h >= 3:
        if _ffn_vmem_bytes(tM, tH, D, h_tiled, w_buffers=3) <= budget:
            w_buffers = 3

    est = _ffn_vmem_bytes(tM, tH, D, h_tiled, w_buffers)
    vmem_limit = int(min(limit_cap, max(int(est * 1.4) + (2 << 20), 8 << 20)))

    kernel = functools.partial(_expert_ffn_kernel, h_tiled=h_tiled)
    scratch = [pltpu.VMEM((tM, D), jnp.float32)] if h_tiled else []

    out = pl.pallas_call(
        kernel,
        out_shape=jax.ShapeDtypeStruct((E, M_pad, D), jnp.bfloat16),
        grid_spec=pltpu.PrefetchScalarGridSpec(
            num_scalar_prefetch=0,
            grid=(E, M_pad // tM, n_h),
            in_specs=[
                pl.BlockSpec((1, tM, D), lambda e, m, h: (e, m, 0)),
                _weight_spec((1, tH, D), lambda e, m, h: (e, h, 0), w_buffers),
                _weight_spec((1, tH, D), lambda e, m, h: (e, h, 0), w_buffers),
            ],
            out_specs=pl.BlockSpec((1, tM, D), lambda e, m, h: (e, m, 0)),
            scratch_shapes=scratch,
        ),
        compiler_params=pltpu.CompilerParams(
            dimension_semantics=("parallel", "parallel", "arbitrary"),
            vmem_limit_bytes=vmem_limit,
        ),
    )(x, w1t, w2)

    return out[:, :M, :] if M_pad != M else out


# --------------------------------------------------------------------------
# Top-2 gating (plain JAX / XLA glue, f32 -- tiny lane dims)
# --------------------------------------------------------------------------
def cumsum_exclusive(t, axis=-2):
    return jnp.cumsum(t, axis=axis) - t


def top2_gating(raw_gate_logits, key, *, policy="random", threshold=0.2,
                capacity_factor=2.0, eps=1e-9):
    raw_gates = jax.nn.softmax(raw_gate_logits.astype(jnp.float32), axis=-1)
    num_gates = raw_gates.shape[-1]
    group_size = raw_gates.shape[-2]

    gate_1 = jnp.max(raw_gates, axis=-1)
    index_1 = jnp.argmax(raw_gates, axis=-1)
    mask_1 = jax.nn.one_hot(index_1, num_gates, dtype=jnp.float32)
    density_1_proxy = raw_gates

    gates_wo_1 = raw_gates * (1.0 - mask_1)
    gate_2 = jnp.max(gates_wo_1, axis=-1)
    index_2 = jnp.argmax(gates_wo_1, axis=-1)
    mask_2 = jax.nn.one_hot(index_2, num_gates, dtype=jnp.float32)

    denom = gate_1 + gate_2 + eps
    gate_1 = gate_1 / denom
    gate_2 = gate_2 / denom

    density_1 = jnp.mean(mask_1, axis=-2)
    density_1_proxy_m = jnp.mean(density_1_proxy, axis=-2)
    loss = jnp.mean(density_1_proxy_m * density_1) * float(num_gates ** 2)

    if policy == "all":
        pass
    elif policy == "none":
        mask_2 = jnp.zeros_like(mask_2)
    elif policy == "threshold":
        mask_2 = mask_2 * (gate_2 > threshold).astype(jnp.float32)[..., None]
    elif policy == "random":
        # torch's in-place uniform_ replaced by a deterministic jax.random draw.
        probs = jax.random.uniform(key, gate_2.shape, dtype=jnp.float32)
        keep = (probs < (gate_2 / max(threshold, eps))).astype(jnp.float32)
        mask_2 = mask_2 * keep[..., None]
    else:
        raise ValueError(f"Unknown policy {policy}")

    expert_capacity = min(group_size, int(group_size * capacity_factor / num_gates))
    expert_capacity = max(expert_capacity, MIN_EXPERT_CAPACITY)
    expert_capacity_f = float(expert_capacity)

    position_in_expert_1 = cumsum_exclusive(mask_1, axis=-2) * mask_1
    mask_1 = mask_1 * (position_in_expert_1 < expert_capacity_f).astype(jnp.float32)
    mask_1_count = jnp.sum(mask_1, axis=-2, keepdims=True)
    mask_1_flat = jnp.sum(mask_1, axis=-1)
    position_in_expert_1 = jnp.sum(position_in_expert_1, axis=-1)
    gate_1 = gate_1 * mask_1_flat

    position_in_expert_2 = cumsum_exclusive(mask_2, axis=-2) + mask_1_count
    position_in_expert_2 = position_in_expert_2 * mask_2
    mask_2 = mask_2 * (position_in_expert_2 < expert_capacity_f).astype(jnp.float32)
    mask_2_flat = jnp.sum(mask_2, axis=-1)
    position_in_expert_2 = jnp.sum(position_in_expert_2, axis=-1)
    gate_2 = gate_2 * mask_2_flat

    # safe_one_hot: out-of-range positions produce all-zero rows (jax.nn.one_hot does this).
    combine_tensor = (
        gate_1[..., None, None] * mask_1_flat[..., None, None]
        * jax.nn.one_hot(index_1, num_gates, dtype=jnp.float32)[..., None]
        * jax.nn.one_hot(position_in_expert_1.astype(jnp.int32),
                         expert_capacity, dtype=jnp.float32)[..., None, :]
        + gate_2[..., None, None] * mask_2_flat[..., None, None]
        * jax.nn.one_hot(index_2, num_gates, dtype=jnp.float32)[..., None]
        * jax.nn.one_hot(position_in_expert_2.astype(jnp.int32),
                         expert_capacity, dtype=jnp.float32)[..., None, :]
    )
    # Matches PyTorch: dispatch_tensor = combine_tensor.bool().to(combine_tensor)
    dispatch_tensor = (combine_tensor != 0.0).astype(combine_tensor.dtype)
    return dispatch_tensor, combine_tensor, loss


# --------------------------------------------------------------------------
# MoE forward
# --------------------------------------------------------------------------
def init_params(key, dim, num_experts=16, hidden_dim=None):
    hidden_dim = hidden_dim if hidden_dim is not None else dim * 4
    k1, k2, k3 = jax.random.split(key, 3)
    std1 = 1.0 / math.sqrt(hidden_dim)   # init_(): std from last dim of logical w1 (D,H)
    std2 = 1.0 / math.sqrt(dim)          # init_(): std from last dim of w2 (H,D)
    # Expert weights stored in bf16 (MXU operand dtype) so each forward pays no
    # f32->bf16 cast over E*D*H; w1 is stored pre-transposed as (E, H, D) so both
    # weight slabs stream as contiguous (tH, D) DMA chunks in the kernel.
    return {
        "w_gating": jax.random.normal(k1, (dim, num_experts), dtype=jnp.float32),
        "w1t": jax.random.uniform(k2, (num_experts, hidden_dim, dim),
                                  minval=-std1, maxval=std1,
                                  dtype=jnp.float32).astype(jnp.bfloat16),
        "w2": jax.random.uniform(k3, (num_experts, hidden_dim, dim),
                                 minval=-std2, maxval=std2,
                                 dtype=jnp.float32).astype(jnp.bfloat16),
    }


def moe_forward(params, inputs, key, *, eval_mode=True, loss_coef=0.01):
    b, n, d = inputs.shape
    e = params["w_gating"].shape[-1]
    capacity_factor = 2.0 if eval_mode else 1.25

    # --- gating logits (lane dim = e << 128): kept in XLA, f32 ---
    logits = jnp.einsum("bnd,de->bne", inputs.astype(jnp.float32), params["w_gating"])
    dispatch, combine, loss = top2_gating(
        logits, key, policy="random", threshold=0.2, capacity_factor=capacity_factor)
    c = dispatch.shape[-1]

    # --- dispatch gather produced directly in bf16 (no f32 (E, M, D) intermediate) ---
    # TODO(synk): replace the dense one-hot dispatch/combine einsums with a
    # scalar-prefetch row gather (PrefetchScalarGridSpec + pl.Element index_map) feeding
    # the FFN kernel, folding the combine gate scale into its epilogue.
    expert_inputs = jnp.einsum("bnd,bnec->ebcd",
                               inputs.astype(jnp.bfloat16),
                               dispatch.astype(jnp.bfloat16))
    x_e = expert_inputs.reshape(e, b * c, d)

    # --- experts: fused bf16-in / f32-accumulate Pallas FFN kernel ---
    out_e = expert_ffn(x_e, params["w1t"], params["w2"])      # (e, b*c, d) bf16
    expert_outputs = out_e.reshape(e, b, c, d)

    # --- combine: consume bf16 directly, accumulate in f32 (no f32 copy first) ---
    output = jnp.einsum("ebcd,bnec->bnd", expert_outputs, combine,
                        preferred_element_type=jnp.float32)

    return output, loss * loss_coef


# --------------------------------------------------------------------------
# Pure-f32 XLA reference (same gating / dispatch path) for tolerance validation
# --------------------------------------------------------------------------
def moe_reference(params, inputs, key, *, eval_mode=True, loss_coef=0.01):
    b, n, d = inputs.shape
    e = params["w_gating"].shape[-1]
    logits = jnp.einsum("bnd,de->bne", inputs.astype(jnp.float32), params["w_gating"])
    dispatch, combine, loss = top2_gating(
        logits, key, policy="random", threshold=0.2,
        capacity_factor=2.0 if eval_mode else 1.25)
    c = dispatch.shape[-1]
    expert_inputs = jnp.einsum("bnd,bnec->ebcd", inputs.astype(jnp.float32), dispatch)
    x_e = expert_inputs.reshape(e, b * c, d)
    w1t = params["w1t"].astype(jnp.float32)
    w2 = params["w2"].astype(jnp.float32)
    hid = jnp.maximum(jnp.einsum("emd,ehd->emh", x_e, w1t), 0.0)
    out_e = jnp.einsum("emh,ehd->emd", hid, w2)
    expert_outputs = out_e.reshape(e, b, c, d)
    output = jnp.einsum("ebcd,bnec->bnd", expert_outputs, combine)
    return output, loss * loss_coef


if __name__ == "__main__":
    key = jax.random.PRNGKey(0)
    pkey, xkey, gkey = jax.random.split(key, 3)

    batch, seq, dim, num_experts = 2, 8, 32, 16
    params = init_params(pkey, dim, num_experts=num_experts)   # hidden_dim = 128
    x = jax.random.normal(xkey, (batch, seq, dim), dtype=jnp.float32)

    out, loss = jax.jit(moe_forward)(params, x, gkey)
    jax.block_until_ready((out, loss))
    assert out.shape == (batch, seq, dim)
    assert loss.shape == ()
    assert bool(jnp.isfinite(loss))

    # Tolerance check against an f32 reference (bf16 MXU operands => small deviation).
    ref_out, _ = moe_reference(params, x, gkey)
    denom = float(jnp.maximum(jnp.max(jnp.abs(ref_out)), 1e-6))
    rel_err = float(jnp.max(jnp.abs(out - ref_out))) / denom
    assert rel_err < 0.05, f"relative error too high: {rel_err}"

    print("KERNEL_OK")
</pallas_src>

<mosaic_0001>
module attributes {stable_mosaic.version = 11 : i64} {
  func.func @_expert_ffn_kernel(%arg0: i32, %arg1: i32, %arg2: i32, %arg3: memref<1x8x32xbf16, #tpu.memory_space<vmem>>, %arg4: memref<1x128x32xbf16, #tpu.memory_space<vmem>>, %arg5: memref<1x128x32xbf16, #tpu.memory_space<vmem>>, %arg6: memref<1x8x32xbf16, #tpu.memory_space<vmem>>) attributes {dimension_semantics = [#tpu.dimension_semantics<parallel>, #tpu.dimension_semantics<parallel>, #tpu.dimension_semantics<arbitrary>], iteration_bounds = array<i64: 16, 1, 1>, scalar_prefetch = 0 : i64, scratch_operands = 0 : i64, tpu.core_type = #tpu.core_type<tc>, window_params = [{transform_indices = @transform_0, window_bounds = array<i64: 1, 8, 32>}, {transform_indices = @transform_1, window_bounds = array<i64: 1, 128, 32>}, {transform_indices = @transform_2, window_bounds = array<i64: 1, 128, 32>}, {transform_indices = @transform_3, window_bounds = array<i64: 1, 8, 32>}]} {
    %c0 = arith.constant 0 : index
    %c0_0 = arith.constant 0 : index
    %c0_1 = arith.constant 0 : index
    %0 = vector.load %arg3[%c0, %c0_0, %c0_1] : memref<1x8x32xbf16, #tpu.memory_space<vmem>>, vector<1x8x32xbf16>
    %1 = vector.shape_cast %0 : vector<1x8x32xbf16> to vector<8x32xbf16>
    %c0_2 = arith.constant 0 : index
    %c0_3 = arith.constant 0 : index
    %c0_4 = arith.constant 0 : index
    %2 = vector.load %arg4[%c0_2, %c0_3, %c0_4] : memref<1x128x32xbf16, #tpu.memory_space<vmem>>, vector<1x128x32xbf16>
    %3 = vector.shape_cast %2 : vector<1x128x32xbf16> to vector<128x32xbf16>
    %cst = arith.constant dense<0.000000e+00> : vector<8x128xf32>
    %4 = tpu.matmul %1, %3, %cst {dimension_numbers = #tpu.dot_dimension_numbers<[1], [1], [0], [0], [0, 0, 1, 0], [], []>} : vector<8x32xbf16>, vector<128x32xbf16>, vector<8x128xf32> -> vector<8x128xf32>
    %cst_5 = arith.constant 0.000000e+00 : f32
    %5 = vector.broadcast %cst_5 : f32 to vector<8x128xf32>
    %6 = arith.maximumf %4, %5 : vector<8x128xf32>
    %7 = arith.truncf %6 : vector<8x128xf32> to vector<8x128xbf16>
    %c0_6 = arith.constant 0 : index
    %c0_7 = arith.constant 0 : index
    %c0_8 = arith.constant 0 : index
    %8 = vector.load %arg5[%c0_6, %c0_7, %c0_8] : memref<1x128x32xbf16, #tpu.memory_space<vmem>>, vector<1x128x32xbf16>
    %9 = vector.shape_cast %8 : vector<1x128x32xbf16> to vector<128x32xbf16>
    %cst_9 = arith.constant dense<0.000000e+00> : vector<8x32xf32>
    %10 = tpu.matmul %7, %9, %cst_9 {dimension_numbers = #tpu.dot_dimension_numbers<[1], [0], [0], [1], [0, 0, 1, 1], [], []>} : vector<8x128xbf16>, vector<128x32xbf16>, vector<8x32xf32> -> vector<8x32xf32>
    %11 = arith.truncf %10 : vector<8x32xf32> to vector<8x32xbf16>
    %c0_10 = arith.constant 0 : index
    %c0_11 = arith.constant 0 : index
    %c0_12 = arith.constant 0 : index
    %12 = vector.load %arg6[%c0_10, %c0_11, %c0_12] : memref<1x8x32xbf16, #tpu.memory_space<vmem>>, vector<1x8x32xbf16>
    %13 = vector.shape_cast %12 : vector<1x8x32xbf16> to vector<8x32xbf16>
    %14 = vector.shape_cast %11 : vector<8x32xbf16> to vector<1x8x32xbf16>
    tpu.vector_store %arg6[%c0_10, %c0_11, %c0_12], %14 {strides = array<i32>} : memref<1x8x32xbf16, #tpu.memory_space<vmem>>, vector<1x8x32xbf16>,
    return
  }
  func.func @transform_0(%arg0: i32, %arg1: i32, %arg2: i32) -> (i32, i32, i32) {
    %c0_i32 = arith.constant 0 : i32
    %c0_i32_0 = arith.constant 0 : i32
    return %arg0, %arg1, %c0_i32 : i32, i32, i32
  }
  func.func @transform_1(%arg0: i32, %arg1: i32, %arg2: i32) -> (i32, i32, i32) {
    %c0_i32 = arith.constant 0 : i32
    %c0_i32_0 = arith.constant 0 : i32
    return %arg0, %arg2, %c0_i32 : i32, i32, i32
  }
  func.func @transform_2(%arg0: i32, %arg1: i32, %arg2: i32) -> (i32, i32, i32) {
    %c0_i32 = arith.constant 0 : i32
    %c0_i32_0 = arith.constant 0 : i32
    return %arg0, %arg2, %c0_i32 : i32, i32, i32
  }
  func.func @transform_3(%arg0: i32, %arg1: i32, %arg2: i32) -> (i32, i32, i32) {
    %c0_i32 = arith.constant 0 : i32
    %c0_i32_0 = arith.constant 0 : i32
    return %arg0, %arg1, %c0_i32 : i32, i32, i32
  }
}

</mosaic_0001>

<bundles_post_ra>
// kernel: moe_forward.1
= control target key start
LH: loop header
LB: loop body
LE: loop exit
PB: predicated region body
PF: predicated region fallthrough
CT: control target
= control target key end

     0   :  { %s733_s12 = smov 0   ;;  %s735_s13 = smov 0   ;;  %s795_s0 = inlined_call_operand.vmem [shape: bf16[16,8,32], index: 0, kind: input, shape index: {}]   ;;  %s796_s1 = inlined_call_operand.vmem [shape: bf16[16,128,32], index: 1, kind: input, shape index: {}]   ;;  %s797_s2 = inlined_call_operand.vmem [shape: bf16[16,128,32], index: 2, kind: input, shape index: {}]   ;;  %s798_s3 = inlined_call_operand.vmem [shape: bf16[16,8,32], index: 3, kind: output, shape index: {}]  }
   0x1   :  { %s737_s14 = smov 0  }
   0x2 LB: > { %s32_s15 = sadd.s32 1, %s707_s13  ;;  %p573_p0 = scmp.ge.s32.totalorder %s711_s14, 1  ;;  %s711_s14 = sphi %s737_s14, %s13_s14   ;;  %s707_s13 = sphi %s735_s13, %s800_s13   ;;  %s703_s12 = sphi %s733_s12, %s799_s12  }
   0x3   : > { %p34_p1 = scmp.ge.s32.totalorder %s32_s15, 16  ;;  %p196_p2 = scmp.lt.s32.totalorder %s711_s14, 17 }
   0x5   : > { %s802_s15 = smov (%p34_p1, %s32_s15), 0  ;;  %p197_p3 = pnand %p573_p0, %p196_p2 }
   0x6   : > { %p242_p4 = scmp.lt.s32.totalorder (!%p197_p3), %s703_s12, 15 }
   0x7   : > { %200 = sbr.rel (%p197_p3) target bundleno = 344 (0x158), region = 32 }
   0xc   : > { %s804_s12 = smov (!%p242_p4, %s703_s12), 15  ;;  %vm333_vm0 = vcmask 261120   ;;  %vm454_vm1 = vcmask 257024  }
   0xd   : > { %s647_s16 = sshll.u32 %s804_s12, 6  ;;  %s574_s23 = sshll.u32 %s804_s12, 2 }
   0xe   : > { %s757_s19 = scalar_lea.vmem %s796_s1, %s647_s16  ;;  %s267_s22 = scalar_lea.vmem %s797_s2, %s647_s16 }
   0xf   : > { %v656_v0 = vld [vmem:[%s757_s19 + $0x38] sm:$0xff]  ;;  %v655_v2 = vld [vmem:[%s757_s19 + $0x30] sm:$0xff]  ;;  %v654_v4 = vld [vmem:[%s757_s19 + $0x28] sm:$0xff]  ;;  %s248_s26 = scalar_lea.vmem %s795_s0, %s574_s23  ;;  %s275_s29 = scalar_lea.vmem %s798_s3, %s574_s23 }
  0x10   : > { %v359_v1 = vsel %vm333_vm0, %v656_v0, 0  ;;  %v356_v3 = vsel %vm333_vm0, %v655_v2, 0  ;;  %v353_v5 = vsel %vm333_vm0, %v654_v4, 0  ;;  %v653_v6 = vld [vmem:[%s757_s19 + $0x20] sm:$0xff]  ;;  %v652_v8 = vld [vmem:[%s757_s19 + $0x18] sm:$0xff]  ;;  %v651_v11 = vld [vmem:[%s757_s19 + $0x10] sm:$0xff] }
  0x11   : > { %361 = vmatpush.bf16.xpose.msra.mxu0 %v359_v1  ;;  %v350_v7 = vsel %vm333_vm0, %v653_v6, 0  ;;  %v347_v9 = vsel %vm333_vm0, %v652_v8, 0  ;;  %v664_v10 = vld [vmem:[%s267_s22 + $0x38] sm:$0xff]  ;;  %v663_v12 = vld [vmem:[%s267_s22 + $0x30] sm:$0xff]  ;;  %v344_v13 = vsel %vm333_vm0, %v651_v11, 0  ;;  %v662_v14 = vld [vmem:[%s267_s22 + $0x28] sm:$0xff] }
  0x12   : > { %440 = vmatpush.bf16.msra.mxu1 %v664_v10  ;;  %v650_v15 = vld [vmem:[%s757_s19 + $0x8] sm:$0xff]  ;;  %v661_v16 = vld [vmem:[%s267_s22 + $0x20] sm:$0xff]  ;;  %v660_v18 = vld [vmem:[%s267_s22 + $0x18] sm:$0xff] }
  0x13   : > { %v341_v17 = vsel %vm333_vm0, %v650_v15, 0  ;;  %v649_v19 = vld [vmem:[%s757_s19] sm:$0xff]  ;;  %v659_v20 = vld [vmem:[%s267_s22 + $0x10] sm:$0xff]  ;;  %v658_v22 = vld [vmem:[%s267_s22 + $0x8] sm:$0xff] }
  0x14   : > { %v338_v21 = vsel %vm333_vm0, %v649_v19, 0  ;;  %v276_v23 = vld [vmem:[%s248_s26] sm:$0xf] }
  0x15   : > { %v657_v24 = vld [vmem:[%s267_s22] sm:$0xff] }
  0x16   : > { %441 = vmatpush.bf16.msra.mxu1 %v663_v12 }
  0x19   : > { %362 = vmatpush.bf16.xpose.msra.mxu0 %v356_v3 }
  0x1a   : > { %442 = vmatpush.bf16.msra.mxu1 %v662_v14 }
  0x1e   : > { %443 = vmatpush.bf16.msra.mxu1 %v661_v16 }
  0x21   : > { %363 = vmatpush.bf16.xpose.msra.mxu0 %v353_v5 }
  0x22   : > { %444 = vmatpush.bf16.msra.mxu1 %v660_v18 }
  0x26   : > { %445 = vmatpush.bf16.msra.mxu1 %v659_v20 }
  0x29   : > { %364 = vmatpush.bf16.xpose.msra.mxu0 %v350_v7 }
  0x2a   : > { %446 = vmatpush.bf16.msra.mxu1 %v658_v22 }
  0x2e   : > { %447 = vmatpush.bf16.msra.mxu1 %v657_v24 }
  0x31   : > { %365 = vmatpush.bf16.xpose.msra.mxu0 %v347_v9 }
  0x39   : > { %366 = vmatpush.bf16.xpose.msra.mxu0 %v344_v13 }
  0x41   : > { %367 = vmatpush.bf16.xpose.msra.mxu0 %v341_v17 }
  0x49   : > { %368 = vmatpush.bf16.xpose.msra.mxu0 %v338_v21 }
  0x50   : > { %612 = vmatmul.msk.bf16.vlgmr.msra.gmra.mxu0 %vm333_vm0, %v276_v23 }
  0xcd   : > { %v370_v25 = vpop.f32.mrf.mxu0 }
  0xce   : > { %v374_v26 = vmax.f32 %v370_v25, 0.0 }
  0xd0   : > { %v375_v27 = vpack.c.bf16 %v374_v26, %v374_v26 }
  0xd2   : > { %448 = vmatmul.bf16.vlgmr.msra.gmra.mxu1 %v375_v27 }
  0xd5   : > { %v372_v28 = vpop.f32.mrf.mxu0 }
 0x14f   : > { %v449_v29 = vpop.f32.mrf.mxu1 }
 0x150   : > { %v453_v30 = vpack.c.bf16 %v449_v29, %v449_v29 }
 0x152   : > { %455 = vst.msk [vmem:[%s275_s29] sm:$0xf] %vm454_vm1, %v453_v30 }
 0x157   : > { %v451_v31 = vpop.f32.mrf.mxu1 }
 0x158 PF: > { %s13_s14 = sadd.s32 1, %s711_s14   ;;  %s799_s12 = smov %s707_s13 }
 0x159   : > { %p10_p5 = scmp.ge.s32.totalorder %s13_s14, 18   ;;  %s800_s13 = smov %s802_s15 }
 0x15b   :  { %12 = sbr.rel (!%p10_p5) target bundleno = 2 (0x2), region = 68 }

</bundles_post_ra>
